<compile_context>
chip_gen: v7x
topology: tpu7x:2x2x1
jax: 0.10.0
libtpu: 0.0.40
codegen_flags: <defaults>
</compile_context>

<pallas_src>
import jax
import jax.numpy as jnp
from jax import lax
from jax.experimental import pallas as pl
from jax.experimental.pallas import tpu as pltpu


def _softmax_of_rowmax_minus(energy):
    # softmax(rowmax(E) - E) in its numerically-stable form:
    #   exp(rowmin(E) - E) / sum(exp(rowmin(E) - E))
    e_min = jnp.min(energy, axis=-1, keepdims=True)
    p = jnp.exp(e_min - energy)
    denom = jnp.sum(p, axis=-1, keepdims=True)
    return p * pl.reciprocal(denom, approx=True)


def _cam_kernel_fused(x_ref, o_ref):
    """tm == C: one (C, tk) tile feeds both sides of the Gram matrix."""
    kstep = pl.program_id(1)

    @pl.when(kstep == 0)
    def _init():
        o_ref[...] = jnp.zeros_like(o_ref)

    xt = x_ref[0]                                      # (C, tk)
    o_ref[0] += lax.dot_general(                        # NT matmul: contract lanes
        xt, xt,
        dimension_numbers=(((1,), (1,)), ((), ())),
        preferred_element_type=jnp.float32,
    )                                                   # (C, C) f32

    @pl.when(kstep == pl.num_programs(1) - 1)
    def _finalize():
        o_ref[0] = _softmax_of_rowmax_minus(o_ref[0])


def _cam_kernel_tiled(q_ref, k_ref, o_ref):
    """tm < C: a row-block of queries against all C key rows."""
    kstep = pl.program_id(2)

    @pl.when(kstep == 0)
    def _init():
        o_ref[...] = jnp.zeros_like(o_ref)

    q = q_ref[0]                                       # (tm, tk)
    kx = k_ref[0]                                      # (C,  tk)
    o_ref[0] += lax.dot_general(
        q, kx,
        dimension_numbers=(((1,), (1,)), ((), ())),
        preferred_element_type=jnp.float32,
    )                                                   # (tm, C) f32

    @pl.when(kstep == pl.num_programs(2) - 1)
    def _finalize():
        o_ref[0] = _softmax_of_rowmax_minus(o_ref[0])


def _pick_row_tile(C, B):
    if C % 8 != 0:
        return C
    # Split rows when B == 1 (work for both megacore TCs) or when C is so
    # large that a (C, C) f32 resident block would be unreasonable.
    for t in (512, 256, 128, 64, 32, 16, 8):
        if C % t == 0 and t < C and (B == 1 or C > 1024):
            return t
    return C


def _pick_k_tile(N, C, tm, in_bytes, budget=40 << 20):
    out_bytes = tm * C * 4
    key_rows = 0 if tm == C else C          # separate key tile only when tiled
    for t in (2048, 1024, 512, 256, 128):
        if N % t == 0:
            need = 2 * (tm * t + key_rows * t) * in_bytes + out_bytes
            if need <= budget:
                return t
    return N


def cam_calculate(x, *, block_rows=None, block_k=None, compute_dtype=None):
    """x: (B, C, H, W) -> attention (B, C, C), matching CAM_Calculate.forward."""
    B, C, H, W = x.shape
    N = H * W
    x_flat = x.reshape(B, C, N)                        # glue reshape in plain JAX
    if compute_dtype is not None:
        # e.g. jnp.bfloat16 on v6e/v7x: halves DMA/VMEM; MXU still accumulates f32.
        x_flat = x_flat.astype(compute_dtype)
    in_bytes = x_flat.dtype.itemsize

    # Row-block over C (must be a multiple of 8 or equal to C).
    tm = block_rows if block_rows is not None else _pick_row_tile(C, B)
    if C % tm or (tm != C and tm % 8):
        tm = C
    # Contraction tile over N = H*W (must be a multiple of 128 or equal to N).
    tk = block_k if block_k is not None else _pick_k_tile(N, C, tm, in_bytes)
    if N % tk or (tk != N and tk % 128):
        tk = N

    if tm == C:
        # Fused path: single input spec -> x DMA'd once per (b, k) step.
        needed = 2 * (C * tk) * in_bytes + C * C * 4
        vmem_limit = int(min(max(needed + (8 << 20), 32 << 20), 64 << 20))
        return pl.pallas_call(
            _cam_kernel_fused,
            out_shape=jax.ShapeDtypeStruct((B, C, C), jnp.float32),
            grid_spec=pltpu.PrefetchScalarGridSpec(
                num_scalar_prefetch=0,
                grid=(B, N // tk),
                in_specs=[pl.BlockSpec((1, C, tk), lambda b, k: (b, 0, k))],
                out_specs=pl.BlockSpec((1, C, C), lambda b, k: (b, 0, 0)),
            ),
            compiler_params=pltpu.CompilerParams(
                dimension_semantics=("parallel", "arbitrary"),
                vmem_limit_bytes=vmem_limit,
            ),
        )(x_flat)

    # Tiled path: row-blocks of queries vs. all C key rows.
    needed = 2 * (tm * tk + C * tk) * in_bytes + tm * C * 4
    vmem_limit = int(min(max(needed + (8 << 20), 32 << 20), 64 << 20))
    return pl.pallas_call(
        _cam_kernel_tiled,
        out_shape=jax.ShapeDtypeStruct((B, C, C), jnp.float32),
        grid_spec=pltpu.PrefetchScalarGridSpec(
            num_scalar_prefetch=0,
            grid=(B, C // tm, N // tk),
            in_specs=[
                pl.BlockSpec((1, tm, tk), lambda b, i, k: (b, i, k)),  # query rows
                pl.BlockSpec((1, C, tk), lambda b, i, k: (b, 0, k)),   # all key rows
            ],
            out_specs=pl.BlockSpec((1, tm, C), lambda b, i, k: (b, i, 0)),
        ),
        compiler_params=pltpu.CompilerParams(
            dimension_semantics=("parallel", "parallel", "arbitrary"),
            vmem_limit_bytes=vmem_limit,
        ),
    )(x_flat, x_flat)


def _reference(x):
    """Pure-JAX reference mirroring the PyTorch module."""
    B, C, H, W = x.shape
    q = x.reshape(B, C, H * W).astype(jnp.float32)
    energy = jnp.einsum("bcn,bdn->bcd", q, q)
    e_new = jnp.max(energy, axis=-1, keepdims=True) - energy
    return jax.nn.softmax(e_new, axis=-1)


if __name__ == "__main__":
    k1, k2 = jax.random.split(jax.random.PRNGKey(0))

    # Test 1: fused path (tm == C); block_k=128 exercises multi-step K
    # accumulation (N = 256 -> 2 k-steps).
    B, C, H, W = 2, 4, 16, 16
    x = jax.random.normal(k1, (B, C, H, W), dtype=jnp.float32)
    out = jax.block_until_ready(cam_calculate(x, block_k=128))
    ref = _reference(x)
    assert out.shape == (B, C, C), out.shape
    err = float(jnp.max(jnp.abs(out - ref)))
    assert jnp.allclose(out, ref, atol=2e-3, rtol=2e-3), err

    # Test 2: tiled row-block path (tm < C) with B == 1 (megacore row split).
    B2, C2, H2, W2 = 1, 16, 8, 8
    x2 = jax.random.normal(k2, (B2, C2, H2, W2), dtype=jnp.float32)
    out2 = jax.block_until_ready(cam_calculate(x2, block_rows=8))
    ref2 = _reference(x2)
    assert out2.shape == (B2, C2, C2), out2.shape
    err2 = float(jnp.max(jnp.abs(out2 - ref2)))
    assert jnp.allclose(out2, ref2, atol=2e-3, rtol=2e-3), err2

    print("KERNEL_OK")
</pallas_src>

<mosaic_0001>
module attributes {stable_mosaic.version = 11 : i64} {
  func.func @_cam_kernel_fused(%arg0: i32, %arg1: i32, %arg2: memref<1x4x128xf32, #tpu.memory_space<vmem>>, %arg3: memref<1x4x4xf32, #tpu.memory_space<vmem>>) attributes {dimension_semantics = [#tpu.dimension_semantics<parallel>, #tpu.dimension_semantics<arbitrary>], iteration_bounds = array<i64: 2, 2>, scalar_prefetch = 0 : i64, scratch_operands = 0 : i64, tpu.core_type = #tpu.core_type<tc>, window_params = [{transform_indices = @transform_0, window_bounds = array<i64: 1, 4, 128>}, {transform_indices = @transform_1, window_bounds = array<i64: 1, 4, 4>}]} {
    %c0_i32 = arith.constant 0 : i32
    %0 = arith.cmpi eq, %arg1, %c0_i32 : i32
    %1 = arith.extui %0 : i1 to i32
    %c0_i32_0 = arith.constant 0 : i32
    %2 = arith.cmpi ne, %1, %c0_i32_0 : i32
    scf.if %2 {
      %cst_10 = arith.constant 0.000000e+00 : f32
      %15 = vector.broadcast %cst_10 : f32 to vector<1x4x4xf32>
      %c0_11 = arith.constant 0 : index
      %c0_12 = arith.constant 0 : index
      %c0_13 = arith.constant 0 : index
      %16 = vector.load %arg3[%c0_11, %c0_12, %c0_13] : memref<1x4x4xf32, #tpu.memory_space<vmem>>, vector<1x4x4xf32>
      tpu.vector_store %arg3[%c0_11, %c0_12, %c0_13], %15 {strides = array<i32>} : memref<1x4x4xf32, #tpu.memory_space<vmem>>, vector<1x4x4xf32>,
    } else {
    }
    %c0 = arith.constant 0 : index
    %c0_1 = arith.constant 0 : index
    %c0_2 = arith.constant 0 : index
    %3 = vector.load %arg2[%c0, %c0_1, %c0_2] : memref<1x4x128xf32, #tpu.memory_space<vmem>>, vector<1x4x128xf32>
    %4 = vector.shape_cast %3 : vector<1x4x128xf32> to vector<4x128xf32>
    %c0_3 = arith.constant 0 : index
    %c0_4 = arith.constant 0 : index
    %c0_5 = arith.constant 0 : index
    %5 = vector.load %arg3[%c0_3, %c0_4, %c0_5] : memref<1x4x4xf32, #tpu.memory_space<vmem>>, vector<1x4x4xf32>
    %6 = vector.shape_cast %5 : vector<1x4x4xf32> to vector<4x4xf32>
    %cst = arith.constant dense<0.000000e+00> : vector<4x4xf32>
    %7 = tpu.matmul %4, %4, %cst {dimension_numbers = #tpu.dot_dimension_numbers<[1], [1], [0], [0], [0, 0, 1, 0], [], []>} : vector<4x128xf32>, vector<4x128xf32>, vector<4x4xf32> -> vector<4x4xf32>
    %8 = arith.addf %6, %7 : vector<4x4xf32>
    %c0_6 = arith.constant 0 : index
    %c0_7 = arith.constant 0 : index
    %c0_8 = arith.constant 0 : index
    %9 = vector.load %arg3[%c0_6, %c0_7, %c0_8] : memref<1x4x4xf32, #tpu.memory_space<vmem>>, vector<1x4x4xf32>
    %10 = vector.shape_cast %9 : vector<1x4x4xf32> to vector<4x4xf32>
    %11 = vector.shape_cast %8 : vector<4x4xf32> to vector<1x4x4xf32>
    tpu.vector_store %arg3[%c0_6, %c0_7, %c0_8], %11 {strides = array<i32>} : memref<1x4x4xf32, #tpu.memory_space<vmem>>, vector<1x4x4xf32>,
    %c1_i32 = arith.constant 1 : i32
    %12 = arith.cmpi eq, %arg1, %c1_i32 : i32
    %13 = arith.extui %12 : i1 to i32
    %c0_i32_9 = arith.constant 0 : i32
    %14 = arith.cmpi ne, %13, %c0_i32_9 : i32
    scf.if %14 {
      %c0_10 = arith.constant 0 : index
      %c0_11 = arith.constant 0 : index
      %c0_12 = arith.constant 0 : index
      %15 = vector.load %arg3[%c0_10, %c0_11, %c0_12] : memref<1x4x4xf32, #tpu.memory_space<vmem>>, vector<1x4x4xf32>
      %16 = vector.shape_cast %15 : vector<1x4x4xf32> to vector<4x4xf32>
      %cst_13 = arith.constant dense<0x7F800000> : vector<4xf32>
      %17 = vector.multi_reduction <minimumf>, %16, %cst_13 [1] : vector<4x4xf32> to vector<4xf32>
      %18 = vector.shape_cast %17 : vector<4xf32> to vector<4x1xf32>
      %19 = vector.broadcast %18 : vector<4x1xf32> to vector<4x4xf32>
      %20 = arith.subf %19, %16 : vector<4x4xf32>
      %21 = math.exp %20 : vector<4x4xf32>
      %cst_14 = arith.constant dense<0.000000e+00> : vector<4xf32>
      %22 = vector.multi_reduction <add>, %21, %cst_14 [1] : vector<4x4xf32> to vector<4xf32>
      %23 = vector.shape_cast %22 : vector<4xf32> to vector<4x1xf32>
      %24 = tpu.reciprocal %23 {approx = true} : vector<4x1xf32> -> vector<4x1xf32>
      %25 = vector.broadcast %24 : vector<4x1xf32> to vector<4x4xf32>
      %26 = arith.mulf %21, %25 : vector<4x4xf32>
      %c0_15 = arith.constant 0 : index
      %c0_16 = arith.constant 0 : index
      %c0_17 = arith.constant 0 : index
      %27 = vector.load %arg3[%c0_15, %c0_16, %c0_17] : memref<1x4x4xf32, #tpu.memory_space<vmem>>, vector<1x4x4xf32>
      %28 = vector.shape_cast %27 : vector<1x4x4xf32> to vector<4x4xf32>
      %29 = vector.shape_cast %26 : vector<4x4xf32> to vector<1x4x4xf32>
      tpu.vector_store %arg3[%c0_15, %c0_16, %c0_17], %29 {strides = array<i32>} : memref<1x4x4xf32, #tpu.memory_space<vmem>>, vector<1x4x4xf32>,
    } else {
    }
    return
  }
  func.func @transform_0(%arg0: i32, %arg1: i32) -> (i32, i32, i32) {
    %c0_i32 = arith.constant 0 : i32
    %c0_i32_0 = arith.constant 0 : i32
    return %arg0, %c0_i32, %arg1 : i32, i32, i32
  }
  func.func @transform_1(%arg0: i32, %arg1: i32) -> (i32, i32, i32) {
    %c0_i32 = arith.constant 0 : i32
    %c0_i32_0 = arith.constant 0 : i32
    %c0_i32_1 = arith.constant 0 : i32
    return %arg0, %c0_i32, %c0_i32_0 : i32, i32, i32
  }
}

</mosaic_0001>

<bundles_post_ra>
// kernel: tpu_custom_call.1
= control target key start
LH: loop header
LB: loop body
LE: loop exit
PB: predicated region body
PF: predicated region fallthrough
CT: control target
= control target key end

     0   :  { %6 = vsyncpa [#allocation3], 0  ;;  %s874_s0 = inlined_call_operand.hbm [shape: f32[2,4,256], index: 0, kind: input, shape index: {}]   ;;  %s875_s1 = inlined_call_operand.hbm [shape: f32[2,4,4], index: 1, kind: output, shape index: {}]  }
   0x1   :  { %8 = vsyncpa [#allocation3 + $0x1], 0 }
   0x2   :  { %9 = vsyncpa [#allocation4], 0 }
   0x3   :  { %11 = vsyncpa [#allocation4 + $0x1], 0  ;;  %s644_s6 = smov 0   ;;  %s646_s7 = smov 0  }
   0x4   :  { %s648_s8 = smov 0   ;;  %s650_s9 = smov 0  }
   0x5   :  { %s652_s10 = smov 0   ;;  %s654_s11 = smov 0  }
   0x6   :  { %s656_s12 = smov 0   ;;  %s658_s13 = smov 0  }
   0x7   :  { %s660_s14 = smov 0   ;;  %s662_s15 = smov 0  }
   0x8   :  { %s664_s16 = smov 0  }
   0x9 LB: > { %s343_s17 = sadd.s32 4294967295, %s627_s16   ;;  %s344_s18 = sadd.s32 4294967294, %s627_s16   ;;  %s627_s16 = sphi %s664_s16, %s17_s16   ;;  %s623_s15 = sphi %s662_s15, %s895_s15   ;;  %s619_s14 = sphi %s660_s14, %s894_s14   ;;  %s615_s13 = sphi %s658_s13, %s893_s13   ;;  %s611_s12 = sphi %s656_s12, %s892_s12   ;;  %s607_s11 = sphi %s654_s11, %s891_s11   ;;  %s603_s10 = sphi %s652_s10, %s890_s10   ;;  %s599_s9 = sphi %s650_s9, %s889_s9   ;;  %s595_s8 = sphi %s648_s8, %s888_s8   ;;  %s591_s7 = sphi %s646_s7, %s887_s7   ;;  %s587_s6 = sphi %s644_s6, %s886_s6  }
   0xa   : > { %s26_s19 = sadd.s32 1, %s619_s14  ;;  %s29_s20 = sadd.s32 1, %s623_s15 }
   0xb   : > { %p27_p0 = scmp.ge.s32.totalorder %s26_s19, 2  ;;  %s38_s21 = sadd.s32 1, %s607_s11 }
   0xc   : > { %p45_p1 = scmp.ne.s32.totalorder %s607_s11, %s603_s10  ;;  %p46_p2 = scmp.eq.s32.totalorder %s627_s16, 0 }
   0xd   : > { %s897_s19 = smov (%p27_p0, %s26_s19), 0  ;;  %s899_s20 = smov (!%p27_p0, %s29_s20), %s623_s15 }
   0xe   : > { %s34_s22 = ssub.s32 %s619_s14, %s897_s19  ;;  %p710_p3 = por %p46_p2, %p45_p1 }
   0xf   : > { %p31_p4 = scmp.ge.s32.totalorder %s899_s20, 2  ;;  %p51_p5 = scmp.ne.s32.totalorder %s603_s10, %s599_s9 }
  0x10   : > { %p52_p6 = scmp.eq.s32.totalorder %s343_s17, 0  ;;  %s64_s24 = sadd.s32 1, %s595_s8 }
  0x11   : > { %s901_s20 = smov (%p31_p4, %s899_s20), 0  ;;  %p74_p8 = scmp.ne.s32.totalorder %s595_s8, %s591_s7 }
  0x12   : > { %p718_p7 = por %p52_p6, %p51_p5  ;;  %s33_s26 = ssub.s32 %s623_s15, %s901_s20 }
  0x13   : > { %p75_p9 = scmp.eq.s32.totalorder %s343_s17, 3  ;;  %s35_s27 = sor.u32 %s34_s22, %s33_s26 }
  0x14   : > { %p62_p10 = scmp.eq.s32.totalorder %s33_s26, 0  ;;  %p36_p11 = scmp.eq.s32.totalorder %s35_s27, 0 }
  0x15   : > { %p726_p12 = por %p75_p9, %p74_p8  ;;  %p80_p13 = scmp.ne.s32.totalorder %s591_s7, %s587_s6 }
  0x16   : > { %s731_s29 = scalar_select %p62_p10, %s595_s8, %s64_s24  }
  0x17   : > { %s879_s28 = scalar_select %p726_p12, 1, 0 }
  0x18   : > { %s734_s30 = scalar_select %p36_p11, %s607_s11, %s38_s21  }
  0x19   : > { %p81_p0 = scmp.eq.s32.totalorder %s344_s18, 3  ;;  %p378_p1 = scmp.lt.s32.totalorder %s627_s16, 4 }
  0x1a   : > { %s101_s3 = sand.u32 1, %s607_s11   ;;  %s348_s5 = sshll.u32 %s623_s15, 1 }
  0x1b   : > { %p739_p2 = por %p81_p0, %p80_p13  ;;  %s347_s4 = sshll.u32 %s101_s3, 2 }
  0x1c   : > { %s110_s9 = sadd.s32 %s619_s14, %s348_s5  ;;  %s105_s17 = scalar_lea.vmem [#allocation2], %s347_s4 }
  0x1d   : > { %s880_s2 = scalar_select %p739_p2, 1, 0 }
  0x1e   : > { %s114_s22 = sshll.u32 %s105_s17, 4  ;;  %s349_s26 = sshll.u32 %s110_s9, 6  ;;  %s746_s22 = int_to_ptr.vmem [resolvable:$true] %s114_s22 }
  0x1f   : > { %s751_s27 = scalar_lea.hbm %s874_s0, %s349_s26  ;;  %p755_p4 = pnand %p378_p1, %p710_p3 }
  0x20   : > { %s102_s4 = scalar_lea.sflag [#allocation3], %s101_s3  ;;  %s475_s5 = scalar_lea.hbm %s751_s27, 64 }
  0x21   : > { %p476_p8 = scmp.ne.s32.totalorder %s751_s27, %s475_s5  ;;  %p477_p9 = pneg %p755_p4 }
  0x22   : > { %s480_s17 = scalar_lea.hbm %s874_s0, 256  ;;  %p481_p3 = scmp.lt.u32.totalorder %s751_s27, %s874_s0 }
  0x23   : > { %p478_p10 = pnand %p477_p9, %p476_p8  ;;  %p482_p13 = scmp.lt.u32.totalorder %s480_s17, %s475_s5 }
  0x24   : > { %p484_p1 = scmp.lt.u32.totalorder %s475_s5, %s751_s27 }
  0x25   : > { %p479_p11 = pneg %p478_p10  ;;  %p483_p0 = por %p482_p13, %p481_p3 }
  0x27   : > { %p485_p5 = por %p484_p1, %p483_p0 }
  0x29   : > { %p486_p6 = pnand %p485_p5, %p479_p11 }
  0x2b   : > { %489 = shalt.err (!%p486_p6)
}
  0x2c   : > { %s490_s3 = scalar_lea.vmem %s746_s22, 64  ;;  %s629_s21 = smov [#allocation2]  }
  0x2d   : > { %p491_p8 = scmp.ne.s32.totalorder %s746_s22, %s490_s3  ;;  %s495_s23 = sshll.u32 %s629_s21, 4  ;;  %s496_s23 = int_to_ptr.vmem [resolvable:$false] %s495_s23 }
  0x2e   : > { %s497_s9 = scalar_lea.vmem %s496_s23, 128  ;;  %p498_p12 = scmp.lt.s32.totalorder %s746_s22, %s496_s23 }
  0x2f   : > { %p493_p10 = pnand %p491_p8, %p477_p9  ;;  %p499_p3 = scmp.lt.s32.totalorder %s497_s9, %s490_s3 }
  0x31   : > { %p494_p2 = pneg %p493_p10  ;;  %p500_p13 = por %p499_p3, %p498_p12 }
  0x33   : > { %p501_p0 = pnand %p500_p13, %p494_p2 }
  0x35   : > { %504 = shalt.err (!%p501_p0)
}
  0x36   : > { %373 = dma.hbm_to_vmem [thread:$0]  (!%p755_p4), %s751_s27, 64, %s746_s22, %s102_s4  }
  0x37   : > { %p882_p5 = scmp.lt.s32.totalorder %s627_s16, 5  ;;  %p883_p6 = scmp.ge.s32.totalorder %s627_s16, 1 }
  0x39   : > { %p120_p9 = pnand %p883_p6, %p882_p5 }
  0x3a   : > { %s125_s5 = sand.u32 (!%p120_p9), 1, %s603_s10  }
  0x3b   : > { %123 = sbr.rel (%p120_p9) target bundleno = 643 (0x283), region = 24  ;;  %s351_s17 = sshll.u32 (!%p120_p9), %s125_s5, 2 }
  0x3c   : > { %s126_s26 = scalar_lea.sflag (!%p120_p9), [#allocation3], %s125_s5  ;;  %s129_s24 = scalar_lea.vmem (!%p120_p9), [#allocation2], %s351_s17 }
  0x42   : > { %578 = dma.done.wait (%p718_p7), %s126_s26, 64  }
  0x43   : > { %580 = vsyncadd (%p718_p7), %s126_s26, 4294967232  ;;  %s145_s18 = sand.u32 1, %s591_s7   ;;  %p353_p12 = scmp.ne.s32.totalorder %s611_s12, 0 }
  0x44   : > { %s352_s22 = sshll.u32 %s145_s18, 2  ;;  %vm152_vm0 = vcmask (!%p353_p12), 27648   ;;  %v630_v0 = vmov (!%p353_p12), 0.0  }
  0x45   : > { %s798_s27 = scalar_lea.vmem [#allocation5], %s352_s22  ;;  %151 = sbr.rel (%p353_p12) target bundleno = 76 (0x4c), region = 32 }
  0x46   : > { %153 = vst.msk [vmem:[%s798_s27] sm:$0xf] (!%p353_p12), %vm152_vm0, %v630_v0 }
  0x4c PF: > { %v154_v1 = vld [vmem:[%s129_s24] sm:$0xf]  ;;  %v631_v2 = vmov 0.0   ;;  %vm632_vm1 = vmmov 0   ;;  %vm227_vm2 = vcmask 27648   ;;  %p354_p7 = scmp.ne.s32.totalorder %s611_s12, 1 }
  0x4d   : > { %361 = vmatprep.subr.mxu0 %v631_v2  ;;  %363 = vmatprep.mubr.msk.f32.mxu0 %vm632_vm1, %v631_v2  ;;  %v155_v3 = vld [vmem:[%s798_s27] sm:$0xf] }
  0x4e   : > { %362 = vmatpush3.xpose.msra.mxu0 %v154_v1 }
  0x51   : > { %364 = vmatmul.mubr.f32.vlgmr.msra.gmra.mrb[0].mxu0 %v154_v1 }
 0x121   : > { %232 = sbr.rel (%p354_p7) target bundleno = 618 (0x26a), region = 36 }
 0x124   : > { %v222_v4 = vpop.f32.mrb[0].mxu0 }
 0x125   : > { %v226_v5 = vadd.f32 %v222_v4, %v155_v3  ;;  %v365_v6 = vpop.f32.mrb[1].mxu0 }
 0x127   : > { %228 = vst.msk [vmem:[%s798_s27] sm:$0xf] %vm227_vm2, %v226_v5 }
 0x12e   : > { %v233_v7 = vld [vmem:[%s798_s27] sm:$0xf] }
 0x12f   : > { %v234_v8 = vsel %vm227_vm2, %v233_v7, inf }
 0x130   : > { %235 = vmin.xlane.f32.xlu0 %v234_v8 }
 0x1bd   : > { %v236_v9 = vpop.xlane.xlu0 %235 }
 0x1be   : > { %v237_v10 = vsub.f32 %v236_v9, %v233_v7 }
 0x1c0   : > { %v238_v11 = vmul.f32 1.442695, %v237_v10 }
 0x1c2   : > { %471 = vpow2.f32 %v238_v11 }
 0x1cc   : > { %v472_v12 = vpop.eup %471 }
 0x1cd   : > { %v240_v13 = vsel %vm227_vm2, %v472_v12, 0.0 }
 0x1ce   : > { %241 = vadd.xlane.f32.xlu0 %v240_v13 }
 0x25b   : > { %v242_v14 = vpop.xlane.xlu0 %241 }
 0x25c   : > { %473 = vrcp.f32 %v242_v14 }
 0x266   : > { %v474_v15 = vpop.eup %473 }
 0x267   : > { %v244_v16 = vmul.f32 %v474_v15, %v472_v12 }
 0x269   : > { %245 = vst.msk [vmem:[%s798_s27] sm:$0xf] %vm227_vm2, %v244_v16 }
 0x26a PF: > { %s356_s12 = sshll.u32 %s615_s13, 6  ;;  %s260_s21 = sshll.u32 %s798_s27, 4  ;;  %s261_s21 = int_to_ptr.vmem [resolvable:$true] %s260_s21 }
 0x26b   : > { %s815_s3 = scalar_lea.hbm %s875_s1, %s356_s12  ;;  %s247_s23 = scalar_lea.sflag [#allocation4], %s145_s18 }
 0x26c   : > { %s505_s9 = scalar_lea.vmem %s261_s21, 64  ;;  %p884_p4 = scmp.ne.s32.totalorder %s879_s28, 0 }
 0x26d   : > { %p506_p2 = scmp.ne.s32.totalorder %s261_s21, %s505_s9  ;;  %s633_s5 = smov [#allocation5]  }
 0x26e   : > { %s509_s17 = sshll.u32 %s633_s5, 4  ;;  %s510_s17 = int_to_ptr.vmem [resolvable:$false] %s509_s17 }
 0x26f   : > { %p507_p11 = pnand %p506_p2, %p884_p4  ;;  %s511_s26 = scalar_lea.vmem %s510_s17, 128 }
 0x270   : > { %p512_p8 = scmp.lt.s32.totalorder %s261_s21, %s510_s17  ;;  %p513_p10 = scmp.lt.s32.totalorder %s511_s26, %s505_s9 }
 0x271   : > { %p508_p1 = pneg %p507_p11 }
 0x272   : > { %p514_p3 = por %p513_p10, %p512_p8 }
 0x274   : > { %p515_p13 = pnand %p514_p3, %p508_p1 }
 0x276   : > { %518 = shalt.err (!%p515_p13)
}
 0x277   : > { %s519_s13 = scalar_lea.hbm %s815_s3, 64  ;;  %s523_s22 = scalar_lea.hbm %s875_s1, 128 }
 0x278   : > { %p520_p0 = scmp.ne.s32.totalorder %s815_s3, %s519_s13  ;;  %p524_p9 = scmp.lt.u32.totalorder %s815_s3, %s875_s1 }
 0x279   : > { %p525_p12 = scmp.lt.u32.totalorder %s523_s22, %s519_s13  ;;  %p527_p2 = scmp.lt.u32.totalorder %s519_s13, %s815_s3 }
 0x27a   : > { %p521_p5 = pnand %p520_p0, %p884_p4 }
 0x27b   : > { %p526_p7 = por %p525_p12, %p524_p9 }
 0x27c   : > { %p522_p6 = pneg %p521_p5 }
 0x27d   : > { %p528_p11 = por %p527_p2, %p526_p7 }
 0x27f   : > { %p529_p1 = pnand %p528_p11, %p522_p6 }
 0x281   : > { %532 = shalt.err (!%p529_p1)
}
 0x282   : > { %368 = dma.vmem_to_hbm [thread:$0]  (%p884_p4), %s261_s21, 64, %s815_s3, %s247_s23  }
 0x283 PF: > { %p379_p8 = scmp.ge.s32.totalorder %s627_s16, 2  ;;  %s272_s25 = sand.u32 1, %s587_s6  }
 0x284   : > { %p885_p10 = scmp.ne.s32.totalorder %s880_s2, 0  ;;  %s273_s4 = scalar_lea.sflag [#allocation4], %s272_s25 }
 0x286   : > { %p375_p3 = pnand %p379_p8, %p885_p10 }
 0x288   : > { %582 = dma.done.wait (!%p375_p3), %s273_s4, 64  }
 0x289   : > { %584 = vsyncadd (!%p375_p3), %s273_s4, 4294967232  ;;  %s17_s16 = sadd.s32 1, %s627_s16   ;;  %s886_s6 = smov %s591_s7 }
 0x28a   : > { %p14_p13 = scmp.ge.s32.totalorder %s17_s16, 6   ;;  %s887_s7 = smov %s595_s8 }
 0x28b   : > { %s888_s8 = smov %s731_s29  ;;  %s889_s9 = smov %s603_s10 }
 0x28c   : > { %s890_s10 = smov %s607_s11  ;;  %s891_s11 = smov %s734_s30 }
 0x28d   : > { %s892_s12 = smov %s619_s14  ;;  %s893_s13 = smov %s623_s15 }
 0x28e   : > { %s894_s14 = smov %s897_s19  ;;  %s895_s15 = smov %s901_s20 }
 0x28f   :  { %16 = sbr.rel (!%p14_p13) target bundleno = 9 (0x9), region = 77 }
 0x296   :  { %278 = vsyncpa [#allocation3], 1 }
 0x297   :  { %280 = vsyncpa [#allocation3 + $0x1], 1 }
 0x298   :  { %281 = vsyncpa [#allocation4], 1 }
 0x299   :  { %283 = vsyncpa [#allocation4 + $0x1], 1 }

</bundles_post_ra>
